<compile_context>
chip_gen: v6e
topology: v6e:2x2x1
jax: 0.10.0
libtpu: 0.0.40
codegen_flags: <defaults>
</compile_context>

<pallas_src>
import jax
import jax.numpy as jnp
from jax import lax
from jax.experimental import pallas as pl
from jax.experimental.pallas import tpu as pltpu

_LANE = 128
_SUBLANE = 8
_DEFAULT_BLOCK_BYTES = 2 * 1024 * 1024  # ~2 MiB of f32 per input block


def _round_up(x, m):
    return ((x + m - 1) // m) * m


def _make_kernel(rows, block_rows, width, ragged):
    """Kernel closure over static tiling parameters."""
    n_chunks = block_rows // _SUBLANE

    def kernel(o_ref, t_ref, m_ref, pd_ref, pm_ref):
        o = o_ref[...].astype(jnp.float32)
        t = t_ref[...].astype(jnp.float32)
        m = m_ref[...].astype(jnp.float32)

        if ragged:
            # Zero out rows of the (padded) trailing block that lie past the
            # end of the array.  Out-of-bounds block contents are undefined,
            # so both the mask and the |diff| must be forced to 0 there.
            i = pl.program_id(0)
            row_ids = i * block_rows + lax.broadcasted_iota(
                jnp.int32, (block_rows, 1), 0)
            valid = row_ids < rows
            m = jnp.where(valid, m, 0.0)

        # pred = 1/(sigmoid(o) + 1e-6) - 1   (sigmoid + recip go to the EUP)
        pred = 1.0 / (jax.nn.sigmoid(o) + 1e-6) - 1.0
        diff = jnp.abs((pred - t) * m)          # identical to |pred*m - t*m|
        if ragged:
            diff = jnp.where(valid, diff, 0.0)  # kill NaNs from garbage rows

        # Reduce (block_rows, width) -> (8, width): free reshape (splits the
        # leading sublane-aligned axis) + VPU adds across row chunks.  The
        # single cross-lane reduce to a scalar happens once, in JAX.
        pd_ref[...] = diff.reshape(n_chunks, _SUBLANE, width).sum(axis=0)
        pm_ref[...] = m.reshape(n_chunks, _SUBLANE, width).sum(axis=0)

    return kernel


def depth_l1_loss(output, target, mask, *, block_bytes=_DEFAULT_BLOCK_BYTES):
    """Pallas implementation of DepthL1Loss.forward.  Returns a scalar f32."""
    n = output.size

    # ---- choose a lane-dense 2D view (free reshape, no data copies) -------
    width = None
    for w in (2048, 1024, 512, 256, 128):
        if n % w == 0 and n // w >= _SUBLANE:
            width = w
            rows = n // w
            break

    if width is not None:
        def _view(x):
            return jnp.reshape(x, (rows, width))
    else:
        # Fallback (n too small or not a multiple of 128): zero-pad the
        # flattened tensors to a (8,128)-aligned slab.  Padded mask == 0, so
        # padding contributes nothing to either sum.
        width = _LANE
        rows = _round_up(max(1, -(-n // width)), _SUBLANE)
        n_pad = rows * width

        def _view(x):
            flat = jnp.reshape(x, (-1,))
            return jnp.pad(flat, (0, n_pad - n)).reshape(rows, width)

    o2, t2, m2 = _view(output), _view(target), _view(mask)

    # ---- block sizing: ~block_bytes of f32 per input block -----------------
    r_target = max(_SUBLANE,
                   ((block_bytes // 4) // width) // _SUBLANE * _SUBLANE)
    block_rows = min(r_target, (rows // _SUBLANE) * _SUBLANE)   # mult of 8, <= rows
    num_blocks = -(-rows // block_rows)
    ragged = (rows % block_rows) != 0

    in_spec = pl.BlockSpec((block_rows, width), lambda i: (i, 0))
    out_spec = pl.BlockSpec((None, _SUBLANE, width), lambda i: (i, 0, 0))

    pd, pm = pl.pallas_call(
        _make_kernel(rows, block_rows, width, ragged),
        out_shape=(
            jax.ShapeDtypeStruct((num_blocks, _SUBLANE, width), jnp.float32),
            jax.ShapeDtypeStruct((num_blocks, _SUBLANE, width), jnp.float32),
        ),
        grid_spec=pltpu.PrefetchScalarGridSpec(
            num_scalar_prefetch=0,
            grid=(num_blocks,),
            in_specs=[in_spec, in_spec, in_spec],
            out_specs=[out_spec, out_spec],
        ),
        compiler_params=pltpu.CompilerParams(
            dimension_semantics=("parallel",)),
    )(o2, t2, m2)

    # Tiny final reduction (~2% of input bytes) + single divide in JAX.
    return jnp.sum(pd) / jnp.sum(pm)


def _reference(output, target, mask):
    o = output.astype(jnp.float32)
    t = target.astype(jnp.float32)
    m = mask.astype(jnp.float32)
    pred = 1.0 / (jax.nn.sigmoid(o) + 1e-6) - 1.0
    return jnp.sum(jnp.abs(pred * m - t * m)) / jnp.sum(m)


if __name__ == "__main__":
    key = jax.random.PRNGKey(0)
    k1, k2, k3 = jax.random.split(key, 3)

    # Primary check (NCHW, as in PyTorch): clean single-block path.
    B, C, H, W = 2, 4, 16, 16
    output = jax.random.normal(k1, (B, C, H, W), dtype=jnp.float32)
    target = jax.random.uniform(k2, (B, C, H, W), dtype=jnp.float32) * 5.0
    mask = (jax.random.uniform(k3, (B, C, H, W)) > 0.3).astype(jnp.float32)

    loss = jax.block_until_ready(jax.jit(depth_l1_loss)(output, target, mask))
    ref = _reference(output, target, mask)
    assert jnp.allclose(loss, ref, rtol=1e-5, atol=1e-5), (loss, ref)

    # Multi-block grid + ragged trailing block (forced via tiny block_bytes).
    k4, k5, k6 = jax.random.split(k3, 3)
    o2 = jax.random.normal(k4, (2, 3, 20, 16), dtype=jnp.float32)
    t2 = jax.random.uniform(k5, (2, 3, 20, 16), dtype=jnp.float32) * 5.0
    m2 = (jax.random.uniform(k6, (2, 3, 20, 16)) > 0.3).astype(jnp.float32)
    l2 = jax.block_until_ready(depth_l1_loss(o2, t2, m2, block_bytes=4096))
    r2 = _reference(o2, t2, m2)
    assert jnp.allclose(l2, r2, rtol=1e-5, atol=1e-5), (l2, r2)

    # Padding fallback path (element count not a multiple of 128).
    o3 = jax.random.normal(k4, (3, 1, 5, 7), dtype=jnp.float32)
    t3 = jax.random.uniform(k5, (3, 1, 5, 7), dtype=jnp.float32) * 5.0
    m3 = (jax.random.uniform(k6, (3, 1, 5, 7)) > 0.3).astype(jnp.float32)
    l3 = jax.block_until_ready(depth_l1_loss(o3, t3, m3))
    r3 = _reference(o3, t3, m3)
    assert jnp.allclose(l3, r3, rtol=1e-5, atol=1e-5), (l3, r3)

    print("KERNEL_OK")
</pallas_src>

<mosaic_0001>
module attributes {stable_mosaic.version = 11 : i64} {
  func.func @kernel(%arg0: i32, %arg1: memref<8x256xf32, #tpu.memory_space<vmem>>, %arg2: memref<8x256xf32, #tpu.memory_space<vmem>>, %arg3: memref<8x256xf32, #tpu.memory_space<vmem>>, %arg4: memref<1x8x256xf32, #tpu.memory_space<vmem>>, %arg5: memref<1x8x256xf32, #tpu.memory_space<vmem>>) attributes {dimension_semantics = [#tpu.dimension_semantics<parallel>], iteration_bounds = array<i64: 1>, scalar_prefetch = 0 : i64, scratch_operands = 0 : i64, tpu.core_type = #tpu.core_type<tc>, window_params = [{transform_indices = @transform_0, window_bounds = array<i64: 8, 256>}, {transform_indices = @transform_1, window_bounds = array<i64: 8, 256>}, {transform_indices = @transform_2, window_bounds = array<i64: 8, 256>}, {transform_indices = @transform_3, window_bounds = array<i64: 1, 8, 256>}, {transform_indices = @transform_4, window_bounds = array<i64: 1, 8, 256>}]} {
    %c0 = arith.constant 0 : index
    %c0_0 = arith.constant 0 : index
    %0 = vector.load %arg1[%c0, %c0_0] : memref<8x256xf32, #tpu.memory_space<vmem>>, vector<8x256xf32>
    %c0_1 = arith.constant 0 : index
    %c0_2 = arith.constant 0 : index
    %1 = vector.load %arg2[%c0_1, %c0_2] : memref<8x256xf32, #tpu.memory_space<vmem>>, vector<8x256xf32>
    %c0_3 = arith.constant 0 : index
    %c0_4 = arith.constant 0 : index
    %2 = vector.load %arg3[%c0_3, %c0_4] : memref<8x256xf32, #tpu.memory_space<vmem>>, vector<8x256xf32>
    %3 = arith.negf %0 : vector<8x256xf32>
    %4 = math.exp %3 : vector<8x256xf32>
    %cst = arith.constant 1.000000e+00 : f32
    %5 = vector.broadcast %cst : f32 to vector<8x256xf32>
    %6 = arith.addf %5, %4 : vector<8x256xf32>
    %7 = arith.divf %5, %6 : vector<8x256xf32>
    %cst_5 = arith.constant 9.99999997E-7 : f32
    %8 = vector.broadcast %cst_5 : f32 to vector<8x256xf32>
    %9 = arith.addf %7, %8 : vector<8x256xf32>
    %cst_6 = arith.constant 1.000000e+00 : f32
    %10 = vector.broadcast %cst_6 : f32 to vector<8x256xf32>
    %11 = arith.divf %10, %9 : vector<8x256xf32>
    %cst_7 = arith.constant 1.000000e+00 : f32
    %12 = vector.broadcast %cst_7 : f32 to vector<8x256xf32>
    %13 = arith.subf %11, %12 : vector<8x256xf32>
    %14 = arith.subf %13, %1 : vector<8x256xf32>
    %15 = arith.mulf %14, %2 : vector<8x256xf32>
    %16 = math.absf %15 : vector<8x256xf32>
    %17 = vector.shape_cast %16 : vector<8x256xf32> to vector<1x8x256xf32>
    %cst_8 = arith.constant dense<0.000000e+00> : vector<8x256xf32>
    %18 = vector.multi_reduction <add>, %17, %cst_8 [0] : vector<1x8x256xf32> to vector<8x256xf32>
    %c0_9 = arith.constant 0 : index
    %c0_10 = arith.constant 0 : index
    %c0_11 = arith.constant 0 : index
    %19 = vector.load %arg4[%c0_9, %c0_10, %c0_11] : memref<1x8x256xf32, #tpu.memory_space<vmem>>, vector<1x8x256xf32>
    %20 = vector.shape_cast %19 : vector<1x8x256xf32> to vector<8x256xf32>
    %21 = vector.shape_cast %18 : vector<8x256xf32> to vector<1x8x256xf32>
    tpu.vector_store %arg4[%c0_9, %c0_10, %c0_11], %21 {strides = array<i32>} : memref<1x8x256xf32, #tpu.memory_space<vmem>>, vector<1x8x256xf32>,
    %22 = vector.shape_cast %2 : vector<8x256xf32> to vector<1x8x256xf32>
    %cst_12 = arith.constant dense<0.000000e+00> : vector<8x256xf32>
    %23 = vector.multi_reduction <add>, %22, %cst_12 [0] : vector<1x8x256xf32> to vector<8x256xf32>
    %c0_13 = arith.constant 0 : index
    %c0_14 = arith.constant 0 : index
    %c0_15 = arith.constant 0 : index
    %24 = vector.load %arg5[%c0_13, %c0_14, %c0_15] : memref<1x8x256xf32, #tpu.memory_space<vmem>>, vector<1x8x256xf32>
    %25 = vector.shape_cast %24 : vector<1x8x256xf32> to vector<8x256xf32>
    %26 = vector.shape_cast %23 : vector<8x256xf32> to vector<1x8x256xf32>
    tpu.vector_store %arg5[%c0_13, %c0_14, %c0_15], %26 {strides = array<i32>} : memref<1x8x256xf32, #tpu.memory_space<vmem>>, vector<1x8x256xf32>,
    return
  }
  func.func @transform_0(%arg0: i32) -> (i32, i32) {
    %c0_i32 = arith.constant 0 : i32
    %c0_i32_0 = arith.constant 0 : i32
    return %arg0, %c0_i32 : i32, i32
  }
  func.func @transform_1(%arg0: i32) -> (i32, i32) {
    %c0_i32 = arith.constant 0 : i32
    %c0_i32_0 = arith.constant 0 : i32
    return %arg0, %c0_i32 : i32, i32
  }
  func.func @transform_2(%arg0: i32) -> (i32, i32) {
    %c0_i32 = arith.constant 0 : i32
    %c0_i32_0 = arith.constant 0 : i32
    return %arg0, %c0_i32 : i32, i32
  }
  func.func @transform_3(%arg0: i32) -> (i32, i32, i32) {
    %c0_i32 = arith.constant 0 : i32
    %c0_i32_0 = arith.constant 0 : i32
    %c0_i32_1 = arith.constant 0 : i32
    return %arg0, %c0_i32, %c0_i32_0 : i32, i32, i32
  }
  func.func @transform_4(%arg0: i32) -> (i32, i32, i32) {
    %c0_i32 = arith.constant 0 : i32
    %c0_i32_0 = arith.constant 0 : i32
    %c0_i32_1 = arith.constant 0 : i32
    return %arg0, %c0_i32, %c0_i32_0 : i32, i32, i32
  }
}

</mosaic_0001>

<bundles_post_ra>
// kernel: depth_l1_loss.1
= control target key start
LH: loop header
LB: loop body
LE: loop exit
PB: predicated region body
PF: predicated region fallthrough
CT: control target
= control target key end

     0   :  { %s135_s0 = inlined_call_operand.vmem [shape: f32[8,256], index: 0, kind: input, shape index: {}]   ;;  %s136_s2 = inlined_call_operand.vmem [shape: f32[8,256], index: 2, kind: input, shape index: {}]   ;;  %s137_s4 = inlined_call_operand.vmem [shape: f32[1,8,256], index: 4, kind: output, shape index: {1}]   ;;  %s138_s1 = inlined_call_operand.vmem [shape: f32[8,256], index: 1, kind: input, shape index: {}]   ;;  %s139_s3 = inlined_call_operand.vmem [shape: f32[1,8,256], index: 3, kind: output, shape index: {0}]  }
   0x1   :  { %v16_v0 = vld [vmem:[%s135_s0] sm:$0xff]  ;;  %v17_v3 = vld [vmem:[%s135_s0 + $0x8] sm:$0xff] }
   0x2   :  { %v20_v1 = vld [vmem:[%s136_s2] sm:$0xff]  ;;  %v64_v2 = vmul.f32 -1.442695, %v16_v0  ;;  %v21_v4 = vld [vmem:[%s136_s2 + $0x8] sm:$0xff]  ;;  %v65_v5 = vmul.f32 -1.442695, %v17_v3 }
   0x3   :  { %54 = vst [vmem:[%s137_s4] sm:$0xff] %v20_v1  ;;  %55 = vst [vmem:[%s137_s4 + $0x8] sm:$0xff] %v21_v4  ;;  %v18_v15 = vld [vmem:[%s138_s1] sm:$0xff]  ;;  %v19_v18 = vld [vmem:[%s138_s1 + $0x8] sm:$0xff] }
   0x4   :  { %68 = vpow2.f32 %v64_v2 }
   0x5   :  { %70 = vpow2.f32 %v65_v5 }
  0x11   :  { %v69_v6 = vpop.eup %68 }
  0x12   :  { %v71_v7 = vpop.eup %70  ;;  %v28_v8 = vadd.f32 1.0, %v69_v6 }
  0x13   :  { %v29_v9 = vadd.f32 1.0, %v71_v7 }
  0x14   :  { %72 = vrcp.f32 %v28_v8 }
  0x15   :  { %74 = vrcp.f32 %v29_v9 }
  0x21   :  { %v73_v10 = vpop.eup %72 }
  0x22   :  { %v75_v11 = vpop.eup %74  ;;  %v34_v12 = vadd.f32 1e-06, %v73_v10 }
  0x23   :  { %v35_v13 = vadd.f32 1e-06, %v75_v11 }
  0x24   :  { %76 = vrcp.f32 %v34_v12 }
  0x25   :  { %78 = vrcp.f32 %v35_v13 }
  0x31   :  { %v77_v14 = vpop.eup %76 }
  0x32   :  { %v79_v16 = vpop.eup %78  ;;  %v66_v17 = vadd.f32 -1.0, %v77_v14 }
  0x33   :  { %v67_v19 = vadd.f32 -1.0, %v79_v16 }
  0x34   :  { %v42_v20 = vsub.f32 %v66_v17, %v18_v15 }
  0x35   :  { %v43_v21 = vsub.f32 %v67_v19, %v19_v18 }
  0x36   :  { %v44_v22 = vmul.f32 %v42_v20, %v20_v1 }
  0x37   :  { %v45_v23 = vmul.f32 %v43_v21, %v21_v4 }
  0x38   :  { %v46_v24 = vand.u32 2147483647, %v44_v22 }
  0x39   :  { %v47_v25 = vand.u32 2147483647, %v45_v23 }
  0x3a   :  { %50 = vst [vmem:[%s139_s3] sm:$0xff] %v46_v24 }
  0x3b   :  { %51 = vst [vmem:[%s139_s3 + $0x8] sm:$0xff] %v47_v25 }

</bundles_post_ra>
